<compile_context>
chip_gen: v5e
topology: v5e:2x2
jax: 0.10.0
libtpu: 0.0.40
codegen_flags: <defaults>
</compile_context>

<pallas_src>
import functools

import jax
import jax.numpy as jnp
from jax import lax
from jax.experimental import pallas as pl
from jax.experimental.pallas import tpu as pltpu


def _round_up(v, m):
    return ((v + m - 1) // m) * m


def _vmem_limit_bytes():
    """Conservative scoped-VMEM limit valid on v5e/v6e (128 MiB) and v7x (64 MiB)."""
    cap = 64 * 1024 * 1024
    try:
        info = pltpu.get_tpu_info()
        cap = int(getattr(info, "vmem_capacity_bytes", cap))
    except Exception:
        pass
    return max(16 * 1024 * 1024, min(64 * 1024 * 1024, cap // 2))


def _choose_spatial_tiles(n, hw, max_tl=8192, max_chunk=512):
    """Pick (grid spatial tile TL, in-kernel register-blocking chunk).

    TL: large DMA block (amortizes ~0.35us/grid-step overhead), multiple of 128.
    chunk: sub-tile the kernel iterates over so live vregs stay within the
    64-vreg file after TL is raised (avoids spill vld/vst traffic).
    No divisibility requirement vs hw: the grid uses cdiv + masked last block.
    """
    hw128 = _round_up(hw, 128)
    tl = min(hw128, max_tl)
    # v7x megacore: with a one-step grid the second TensorCore idles — split
    # the spatial axis when batch provides no parallelism.
    if n == 1 and tl >= hw128 and hw128 > 128:
        tl = _round_up(hw128 // 2, 128)
    chunk = min(tl, max_chunk)
    while tl % chunk != 0:   # tl is a multiple of 128, so this terminates at 128
        chunk -= 128
    return tl, chunk


def _regulator_kernel(x_ref, w_ref, b_ref, c_ref, h_ref, *, chunk, n_chunks):
    # x_ref: (C_in, TL)   w_ref: (4*IC, C_in)   b_ref: (4*IC, 1)
    # c_ref / h_ref: (IC, TL)
    w = w_ref[...].astype(jnp.float32)
    ic = c_ref.shape[0]
    # Hoisted broadcast (JAX does not CSE broadcast_in_dim inside the loop).
    bias_full = jnp.broadcast_to(b_ref[...].astype(jnp.float32), (4 * ic, chunk))

    def body(ci, carry):
        off = pl.multiple_of(ci * chunk, 128)
        x = x_ref[:, pl.ds(off, chunk)].astype(jnp.float32)
        # (4*IC, C_in) @ (C_in, chunk) -> (4*IC, chunk); lanes = spatial pixels.
        y = jnp.dot(w, x, preferred_element_type=jnp.float32) + bias_full

        # sigmoid(z) == 0.5*tanh(0.5*z) + 0.5  : one EUP push per element
        # (vs exp + reciprocal), fused over the packed (3*IC, chunk) slab.
        gates = 0.5 * jnp.tanh(0.5 * y[0:3 * ic, :]) + 0.5
        a = gates[0 * ic:1 * ic, :]
        b = gates[1 * ic:2 * ic, :]
        g = gates[2 * ic:3 * ic, :]
        d = jnp.tanh(y[3 * ic:4 * ic, :])

        c = a * g * d
        h = b * jnp.tanh(c)

        c_ref[:, pl.ds(off, chunk)] = c.astype(c_ref.dtype)
        h_ref[:, pl.ds(off, chunk)] = h.astype(h_ref.dtype)
        return carry

    if n_chunks == 1:
        body(0, 0)
    else:
        # Loop (not fully unrolled) bounds live ranges to ~1 chunk of vregs.
        lax.fori_loop(0, n_chunks, body, 0)


@functools.partial(jax.jit, static_argnames=("intermediate_channels",))
def regulator_init_forward(x_nchw, state, weight, bias, *, intermediate_channels):
    """Pallas implementation of Regulator_init.forward (kernel_size=1).

    x_nchw : (N, C_in, H, W) float32
    state  : unused (matches the PyTorch signature; the module ignores it)
    weight : (4*IC, C_in) float32   (Conv2d 1x1 weight squeezed)
    bias   : (4*IC,) float32
    returns (c, h) each of shape (N, IC, H, W)
    """
    del state  # unused by the reference module
    n, c_in, hgt, wid = x_nchw.shape
    ic = intermediate_channels
    c_out = 4 * ic
    hw = hgt * wid

    tl, chunk = _choose_spatial_tiles(n, hw)
    n_tiles = pl.cdiv(hw, tl)
    n_chunks = tl // chunk

    # NCHW -> (N, C_in, HW): pure reshape view. No pad, no extra HBM pass.
    x_flat = x_nchw.reshape(n, c_in, hw)
    b_mat = bias.reshape(c_out, 1)

    kernel = functools.partial(_regulator_kernel, chunk=chunk, n_chunks=n_chunks)

    lanes_moved = n * n_tiles * tl
    cost = pl.CostEstimate(
        flops=2 * lanes_moved * c_in * c_out + 8 * lanes_moved * ic,
        transcendentals=5 * lanes_moved * ic,
        bytes_accessed=4 * (lanes_moved * c_in + 2 * n * hw * ic
                            + c_out * c_in + c_out),
    )

    c_flat, h_flat = pl.pallas_call(
        kernel,
        out_shape=(
            jax.ShapeDtypeStruct((n, ic, hw), x_nchw.dtype),
            jax.ShapeDtypeStruct((n, ic, hw), x_nchw.dtype),
        ),
        grid_spec=pltpu.PrefetchScalarGridSpec(
            num_scalar_prefetch=0,
            grid=(n, n_tiles),
            in_specs=[
                pl.BlockSpec((None, c_in, tl), lambda b, t: (b, 0, t)),
                pl.BlockSpec((c_out, c_in), lambda b, t: (0, 0)),
                pl.BlockSpec((c_out, 1), lambda b, t: (0, 0)),
            ],
            out_specs=[
                pl.BlockSpec((None, ic, tl), lambda b, t: (b, 0, t)),
                pl.BlockSpec((None, ic, tl), lambda b, t: (b, 0, t)),
            ],
        ),
        compiler_params=pltpu.CompilerParams(
            dimension_semantics=("parallel", "parallel"),
            vmem_limit_bytes=_vmem_limit_bytes(),
        ),
        cost_estimate=cost,
    )(x_flat, weight, b_mat)

    # Free views (last dim is exactly hw, nothing to slice away).
    return (c_flat.reshape(n, ic, hgt, wid),
            h_flat.reshape(n, ic, hgt, wid))


def _reference_jax(x_nchw, weight, bias, ic):
    """Plain-JAX reference of the PyTorch forward (1x1 conv path), in NCHW."""
    n, c_in, hgt, wid = x_nchw.shape
    y = jnp.einsum("oc,ncs->nos", weight, x_nchw.reshape(n, c_in, hgt * wid))
    y = y + bias[None, :, None]
    a = jax.nn.sigmoid(y[:, 0 * ic:1 * ic])
    b = jax.nn.sigmoid(y[:, 1 * ic:2 * ic])
    g = jax.nn.sigmoid(y[:, 2 * ic:3 * ic])
    d = jnp.tanh(y[:, 3 * ic:4 * ic])
    c = a * g * d
    h = b * jnp.tanh(c)
    return c.reshape(n, ic, hgt, wid), h.reshape(n, ic, hgt, wid)


if __name__ == "__main__":
    # Small shapes consistent with the module.
    N, C_IN, H, W = 2, 4, 16, 16
    IC = 8                       # intermediate_channels
    C_OUT = 4 * IC

    key = jax.random.PRNGKey(0)
    kx, kw, kb, kc, kh = jax.random.split(key, 5)

    x = jax.random.normal(kx, (N, C_IN, H, W), dtype=jnp.float32)
    # state is unused by the module's forward; provide tensors anyway.
    state = (
        jax.random.normal(kc, (N, IC, H, W), dtype=jnp.float32),
        jax.random.normal(kh, (N, IC, H, W), dtype=jnp.float32),
    )

    # Deterministic Conv2d(1x1) parameters (kaiming-uniform-like bounds).
    fan_in = C_IN * 1 * 1
    bound = 1.0 / (fan_in ** 0.5)
    weight = jax.random.uniform(kw, (C_OUT, C_IN), minval=-bound, maxval=bound,
                                dtype=jnp.float32)
    bias = jax.random.uniform(kb, (C_OUT,), minval=-bound, maxval=bound,
                              dtype=jnp.float32)

    c_out, h_out = regulator_init_forward(
        x, state, weight, bias, intermediate_channels=IC)
    jax.block_until_ready((c_out, h_out))

    c_ref, h_ref = _reference_jax(x, weight, bias, IC)
    assert c_out.shape == (N, IC, H, W) and h_out.shape == (N, IC, H, W)
    assert jnp.allclose(c_out, c_ref, atol=1e-5, rtol=1e-5)
    assert jnp.allclose(h_out, h_ref, atol=1e-5, rtol=1e-5)

    print("KERNEL_OK")
</pallas_src>

<mosaic_0001>
module attributes {stable_mosaic.version = 11 : i64} {
  func.func @_regulator_kernel(%arg0: i32, %arg1: i32, %arg2: memref<1x4x256xf32, #tpu.memory_space<vmem>>, %arg3: memref<32x4xf32, #tpu.memory_space<vmem>>, %arg4: memref<32x1xf32, #tpu.memory_space<vmem>>, %arg5: memref<1x8x256xf32, #tpu.memory_space<vmem>>, %arg6: memref<1x8x256xf32, #tpu.memory_space<vmem>>) attributes {dimension_semantics = [#tpu.dimension_semantics<parallel>, #tpu.dimension_semantics<parallel>], iteration_bounds = array<i64: 2, 1>, scalar_prefetch = 0 : i64, scratch_operands = 0 : i64, tpu.core_type = #tpu.core_type<tc>, window_params = [{transform_indices = @transform_0, window_bounds = array<i64: 1, 4, 256>}, {pipeline_mode = #tpu.pipeline_mode<synchronous>, transform_indices = @transform_1, window_bounds = array<i64: 32, 4>}, {pipeline_mode = #tpu.pipeline_mode<synchronous>, transform_indices = @transform_2, window_bounds = array<i64: 32, 1>}, {transform_indices = @transform_3, window_bounds = array<i64: 1, 8, 256>}, {transform_indices = @transform_4, window_bounds = array<i64: 1, 8, 256>}]} {
    %c0 = arith.constant 0 : index
    %c0_0 = arith.constant 0 : index
    %0 = vector.load %arg3[%c0, %c0_0] : memref<32x4xf32, #tpu.memory_space<vmem>>, vector<32x4xf32>
    %c0_1 = arith.constant 0 : index
    %c0_2 = arith.constant 0 : index
    %1 = vector.load %arg4[%c0_1, %c0_2] : memref<32x1xf32, #tpu.memory_space<vmem>>, vector<32x1xf32>
    %2 = vector.shape_cast %1 : vector<32x1xf32> to vector<32x1xf32>
    %3 = vector.broadcast %2 : vector<32x1xf32> to vector<32x256xf32>
    %c0_i32 = arith.constant 0 : i32
    %4 = tpu.assume_multiple %c0_i32, 128 : i32
    %c0_3 = arith.constant 0 : index
    %c0_4 = arith.constant 0 : index
    %5 = arith.index_cast %4 : i32 to index
    %6 = vector.load %arg2[%c0_3, %c0_4, %5] : memref<1x4x256xf32, #tpu.memory_space<vmem>>, vector<1x4x256xf32>
    %7 = vector.shape_cast %6 : vector<1x4x256xf32> to vector<4x256xf32>
    %cst = arith.constant dense<0.000000e+00> : vector<32x256xf32>
    %8 = tpu.matmul %0, %7, %cst {dimension_numbers = #tpu.dot_dimension_numbers<[1], [0], [0], [1], [0, 0, 1, 1], [], []>} : vector<32x4xf32>, vector<4x256xf32>, vector<32x256xf32> -> vector<32x256xf32>
    %9 = arith.addf %8, %3 : vector<32x256xf32>
    %10 = vector.extract_strided_slice %9 {offsets = [0, 0], sizes = [24, 256], strides = [1, 1]} : vector<32x256xf32> to vector<24x256xf32>
    %cst_5 = arith.constant 5.000000e-01 : f32
    %11 = vector.broadcast %cst_5 : f32 to vector<24x256xf32>
    %12 = arith.mulf %11, %10 : vector<24x256xf32>
    %13 = math.tanh %12 : vector<24x256xf32>
    %cst_6 = arith.constant 5.000000e-01 : f32
    %14 = vector.broadcast %cst_6 : f32 to vector<24x256xf32>
    %15 = arith.mulf %14, %13 : vector<24x256xf32>
    %cst_7 = arith.constant 5.000000e-01 : f32
    %16 = vector.broadcast %cst_7 : f32 to vector<24x256xf32>
    %17 = arith.addf %15, %16 : vector<24x256xf32>
    %18 = vector.extract_strided_slice %17 {offsets = [0, 0], sizes = [8, 256], strides = [1, 1]} : vector<24x256xf32> to vector<8x256xf32>
    %19 = vector.extract_strided_slice %17 {offsets = [8, 0], sizes = [8, 256], strides = [1, 1]} : vector<24x256xf32> to vector<8x256xf32>
    %20 = vector.extract_strided_slice %17 {offsets = [16, 0], sizes = [8, 256], strides = [1, 1]} : vector<24x256xf32> to vector<8x256xf32>
    %21 = vector.extract_strided_slice %9 {offsets = [24, 0], sizes = [8, 256], strides = [1, 1]} : vector<32x256xf32> to vector<8x256xf32>
    %22 = math.tanh %21 : vector<8x256xf32>
    %23 = arith.mulf %18, %20 : vector<8x256xf32>
    %24 = arith.mulf %23, %22 : vector<8x256xf32>
    %25 = math.tanh %24 : vector<8x256xf32>
    %26 = arith.mulf %19, %25 : vector<8x256xf32>
    %c0_8 = arith.constant 0 : index
    %c0_9 = arith.constant 0 : index
    %27 = arith.index_cast %4 : i32 to index
    %28 = vector.load %arg5[%c0_8, %c0_9, %27] : memref<1x8x256xf32, #tpu.memory_space<vmem>>, vector<1x8x256xf32>
    %29 = vector.shape_cast %28 : vector<1x8x256xf32> to vector<8x256xf32>
    %30 = vector.shape_cast %24 : vector<8x256xf32> to vector<1x8x256xf32>
    tpu.vector_store %arg5[%c0_8, %c0_9, %27], %30 {strides = array<i32>} : memref<1x8x256xf32, #tpu.memory_space<vmem>>, vector<1x8x256xf32>,
    %c0_10 = arith.constant 0 : index
    %c0_11 = arith.constant 0 : index
    %31 = arith.index_cast %4 : i32 to index
    %32 = vector.load %arg6[%c0_10, %c0_11, %31] : memref<1x8x256xf32, #tpu.memory_space<vmem>>, vector<1x8x256xf32>
    %33 = vector.shape_cast %32 : vector<1x8x256xf32> to vector<8x256xf32>
    %34 = vector.shape_cast %26 : vector<8x256xf32> to vector<1x8x256xf32>
    tpu.vector_store %arg6[%c0_10, %c0_11, %31], %34 {strides = array<i32>} : memref<1x8x256xf32, #tpu.memory_space<vmem>>, vector<1x8x256xf32>,
    return
  }
  func.func @transform_0(%arg0: i32, %arg1: i32) -> (i32, i32, i32) {
    %c0_i32 = arith.constant 0 : i32
    %c0_i32_0 = arith.constant 0 : i32
    return %arg0, %c0_i32, %arg1 : i32, i32, i32
  }
  func.func @transform_1(%arg0: i32, %arg1: i32) -> (i32, i32) {
    %c0_i32 = arith.constant 0 : i32
    %c0_i32_0 = arith.constant 0 : i32
    %c0_i32_1 = arith.constant 0 : i32
    return %c0_i32, %c0_i32_0 : i32, i32
  }
  func.func @transform_2(%arg0: i32, %arg1: i32) -> (i32, i32) {
    %c0_i32 = arith.constant 0 : i32
    %c0_i32_0 = arith.constant 0 : i32
    %c0_i32_1 = arith.constant 0 : i32
    return %c0_i32, %c0_i32_0 : i32, i32
  }
  func.func @transform_3(%arg0: i32, %arg1: i32) -> (i32, i32, i32) {
    %c0_i32 = arith.constant 0 : i32
    %c0_i32_0 = arith.constant 0 : i32
    return %arg0, %c0_i32, %arg1 : i32, i32, i32
  }
  func.func @transform_4(%arg0: i32, %arg1: i32) -> (i32, i32, i32) {
    %c0_i32 = arith.constant 0 : i32
    %c0_i32_0 = arith.constant 0 : i32
    return %arg0, %c0_i32, %arg1 : i32, i32, i32
  }
}

</mosaic_0001>

<bundles_post_ra>
// kernel: regulator_init_forward.1
= control target key start
LH: loop header
LB: loop body
LE: loop exit
PB: predicated region body
PF: predicated region fallthrough
CT: control target
= control target key end

     0   :  { %s670_s15 = smov 0   ;;  %s672_s16 = smov 0   ;;  %s742_s0 = inlined_call_operand.vmem [shape: f32[2,4,256], index: 0, kind: input, shape index: {}]   ;;  %s743_s1 = inlined_call_operand.vmem [shape: f32[32,4], index: 1, kind: input, shape index: {}]   ;;  %s744_s2 = inlined_call_operand.vmem [shape: f32[32,1], index: 2, kind: input, shape index: {}]   ;;  %s745_s3 = inlined_call_operand.vmem [shape: f32[2,8,256], index: 3, kind: output, shape index: {0}]   ;;  %s746_s4 = inlined_call_operand.vmem [shape: f32[2,8,256], index: 4, kind: output, shape index: {1}]  }
   0x1   :  { %s674_s17 = smov 0  }
   0x2 LB: > { %s27_s18 = sadd.s32 1, %s638_s16  ;;  %p549_p0 = scmp.ge.s32.totalorder %s642_s17, 1  ;;  %s642_s17 = sphi %s674_s17, %s15_s17   ;;  %s638_s16 = sphi %s672_s16, %s748_s16   ;;  %s634_s15 = sphi %s670_s15, %s747_s15  }
   0x3   : > { %p29_p1 = scmp.ge.s32.totalorder %s27_s18, 2  ;;  %p188_p2 = scmp.lt.s32.totalorder %s642_s17, 3 }
   0x5   : > { %s750_s18 = smov (%p29_p1, %s27_s18), 0  ;;  %p189_p3 = pnand %p549_p0, %p188_p2 }
   0x6   : > { %p232_p4 = scmp.lt.s32.totalorder (!%p189_p3), %s634_s15, 1 }
   0x7   : > { %192 = sbr.rel (%p189_p3) target bundleno = 188 (0xbc), region = 32 }
   0xc   : > { %v644_v0 = vmov 0   ;;  %v265_v1 = vld [vmem:[%s744_s2] sm:$0xff]  ;;  %s752_s15 = smov (!%p232_p4, %s634_s15), 1  ;;  %v268_v2 = vld [vmem:[%s744_s2 + $0x18] sm:$0xff]  ;;  %v267_v4 = vld [vmem:[%s744_s2 + $0x10] sm:$0xff]  ;;  %vm307_vm0 = vcmask 1043456  }
   0xd   : > { %598 = vset.pattern.permute.xlu0 %v644_v0  ;;  %599 = vset.pattern.permute.xlu1 %v644_v0  ;;  %s568_s23 = sshll.u32 %s752_s15, 3  ;;  %v266_v5 = vld [vmem:[%s744_s2 + $0x8] sm:$0xff]  ;;  %v261_v6 = vld [vmem:[%s743_s1] sm:$0xff]  ;;  %vm294_vm1 = vcmask 31744   ;;  %v263_v7 = vld [vmem:[%s743_s1 + $0x10] sm:$0xff]  ;;  %s569_s13 = sshll.u32 %s752_s15, 4 }
   0xe   : > { %271 = vperm.xlu0 %598, %v265_v1   ;;  %286 = vperm.xlu1 %599, %v268_v2   ;;  %s239_s26 = scalar_lea.vmem %s742_s0, %s568_s23  ;;  %v264_v10 = vld [vmem:[%s743_s1 + $0x18] sm:$0xff]  ;;  %v262_v11 = vld [vmem:[%s743_s1 + $0x8] sm:$0xff]  ;;  %s249_s20 = scalar_lea.vmem %s745_s3, %s569_s13 }
   0xf   : > { %v289_v3 = vld [vmem:[%s239_s26] sm:$0xff]  ;;  %s259_s22 = scalar_lea.vmem %s746_s4, %s569_s13 }
  0x10   : > { %291 = vst [vmem:[#allocation1] ss:$2 sm:$0xff] %v289_v3 }
  0x16   : > { %281 = vperm.xlu0 %598, %v267_v4   ;;  %276 = vperm.xlu1 %599, %v266_v5  }
  0x17   : > { %v292_v8 = vld.sshfl [vmem:[#allocation1] sm:$0xff pattern:$0x75316420]  ;;  %v293_v9 = vld.sshfl [vmem:[#allocation1 + $0x8] sm:$0xff pattern:$0x75316420] }
  0x18   : > { %556 = vmatpush.msk.msra.mxu0 %vm307_vm0, %v292_v8  ;;  %571 = vmatpush.msk.msra.mxu2 %vm307_vm0, %v292_v8 }
  0x19   : > { %561 = vmatpush.msk.msra.mxu1 %vm307_vm0, %v293_v9  ;;  %572 = vmatpush.msk.msra.mxu3 %vm307_vm0, %v293_v9 }
  0x1a   : > { %557 = vmatmul.msk.f32.vlgmr.msra.gmra.mxu0 %vm294_vm1, %v261_v6  ;;  %559 = vmatmul.msk.f32.vlgmr.msra.gmra.mxu2 %vm294_vm1, %v263_v7 }
  0x1b   : > { %562 = vmatmul.msk.f32.vlgmr.msra.gmra.mxu1 %vm294_vm1, %v261_v6  ;;  %564 = vmatmul.msk.f32.vlgmr.msra.gmra.mxu3 %vm294_vm1, %v263_v7 }
  0x22   : > { %560 = vmatmul.msk.f32.gmra.mxu2 %vm294_vm1, %v264_v10  ;;  %558 = vmatmul.msk.f32.gmra.mxu0 %vm294_vm1, %v262_v11 }
  0x23   : > { %565 = vmatmul.msk.f32.gmra.mxu3 %vm294_vm1, %v264_v10  ;;  %563 = vmatmul.msk.f32.gmra.mxu1 %vm294_vm1, %v262_v11 }
  0x80   : > { %v272_v12 = vpop.permute.xlu0 %271  ;;  %v287_v13 = vpop.permute.xlu1 %286 }
  0x88   : > { %v282_v20 = vpop.permute.xlu0 %281  ;;  %v277_v22 = vpop.permute.xlu1 %276 }
  0x97   : > { %v329_v14 = vpop.f32.mrf.mxu0 }
  0x98   : > { %v330_v15 = vadd.f32 %v329_v14, %v272_v12  ;;  %v358_v16 = vpop.f32.mrf.mxu1 }
  0x99   : > { %v359_v17 = vadd.f32 %v358_v16, %v272_v12 }
  0x9a   : > { %v370_v18 = vmul.f32 0.5, %v330_v15 }
  0x9b   : > { %v371_v19 = vmul.f32 0.5, %v359_v17 }
  0x9c   : > { %600 = vtanh.f32 %v370_v18 }
  0x9d   : > { %v335_v21 = vpop.f32.mrf.mxu2  ;;  %602 = vtanh.f32 %v371_v19 }
  0x9e   : > { %v336_v23 = vadd.f32 %v335_v21, %v282_v20  ;;  %v364_v24 = vpop.f32.mrf.mxu3 }
  0x9f   : > { %v365_v25 = vadd.f32 %v364_v24, %v282_v20  ;;  %v332_v26 = vpop.f32.mrf.mxu0 }
  0xa0   : > { %v374_v27 = vmul.f32 0.5, %v336_v23  ;;  %v333_v28 = vadd.f32 %v332_v26, %v277_v22  ;;  %v361_v29 = vpop.f32.mrf.mxu1 }
  0xa1   : > { %v375_v30 = vmul.f32 0.5, %v365_v25  ;;  %v362_v31 = vadd.f32 %v361_v29, %v277_v22 }
  0xa2   : > { %604 = vtanh.f32 %v374_v27  ;;  %v372_v32 = vmul.f32 0.5, %v333_v28  ;;  %v601_v33 = vpop.eup %600 }
  0xa3   : > { %606 = vtanh.f32 %v375_v30  ;;  %v603_v34 = vpop.eup %602  ;;  %v373_v36 = vmul.f32 0.5, %v362_v31  ;;  %v382_v39 = vmul.f32 0.5, %v601_v33 }
  0xa4   : > { %608 = vtanh.f32 %v372_v32  ;;  %v383_v42 = vmul.f32 0.5, %v603_v34 }
  0xa5   : > { %v338_v35 = vpop.f32.mrf.mxu2  ;;  %v388_v46 = vadd.f32 0.5, %v382_v39 }
  0xa6   : > { %v339_v37 = vadd.f32 %v338_v35, %v287_v13  ;;  %v367_v38 = vpop.f32.mrf.mxu3  ;;  %v389_v48 = vadd.f32 0.5, %v383_v42 }
  0xa7   : > { %v368_v40 = vadd.f32 %v367_v38, %v287_v13 }
  0xa8   : > { %v605_v41 = vpop.eup %604  ;;  %610 = vtanh.f32 %v339_v37 }
  0xa9   : > { %v607_v43 = vpop.eup %606  ;;  %v386_v44 = vmul.f32 0.5, %v605_v41  ;;  %612 = vtanh.f32 %v368_v40 }
  0xaa   : > { %v387_v45 = vmul.f32 0.5, %v607_v43  ;;  %614 = vtanh.f32 %v373_v36  ;;  %v609_v50 = vpop.eup %608 }
  0xab   : > { %v392_v47 = vadd.f32 0.5, %v386_v44  ;;  %v384_v58 = vmul.f32 0.5, %v609_v50 }
  0xac   : > { %v393_v49 = vadd.f32 0.5, %v387_v45 }
  0xad   : > { %v396_v51 = vmul.f32 %v392_v47, %v388_v46  ;;  %v390_v60 = vadd.f32 0.5, %v384_v58 }
  0xae   : > { %v611_v52 = vpop.eup %610  ;;  %v397_v53 = vmul.f32 %v393_v49, %v389_v48 }
  0xaf   : > { %v613_v54 = vpop.eup %612  ;;  %v398_v55 = vmul.f32 %v611_v52, %v396_v51 }
  0xb0   : > { %v615_v56 = vpop.eup %614  ;;  %v399_v57 = vmul.f32 %v613_v54, %v397_v53 }
  0xb1   : > { %616 = vtanh.f32 %v398_v55  ;;  %404 = vst [vmem:[%s249_s20] sm:$0xff] %v398_v55  ;;  %v385_v59 = vmul.f32 0.5, %v615_v56 }
  0xb2   : > { %618 = vtanh.f32 %v399_v57  ;;  %405 = vst [vmem:[%s249_s20 + $0x8] sm:$0xff] %v399_v57 }
  0xb3   : > { %v391_v62 = vadd.f32 0.5, %v385_v59 }
  0xb7   : > { %v617_v61 = vpop.eup %616 }
  0xb8   : > { %v619_v63 = vpop.eup %618  ;;  %v402_v0 = vmul.f32 %v617_v61, %v390_v60 }
  0xb9   : > { %v403_v1 = vmul.f32 %v619_v63, %v391_v62 }
  0xba   : > { %406 = vst [vmem:[%s259_s22] sm:$0xff] %v402_v0 }
  0xbb   : > { %407 = vst [vmem:[%s259_s22 + $0x8] sm:$0xff] %v403_v1 }
  0xbc PF: > { %s15_s17 = sadd.s32 1, %s642_s17   ;;  %s747_s15 = smov %s638_s16 }
  0xbd   : > { %p12_p5 = scmp.ge.s32.totalorder %s15_s17, 4   ;;  %s748_s16 = smov %s750_s18 }
  0xbf   :  { %14 = sbr.rel (!%p12_p5) target bundleno = 2 (0x2), region = 74 }

</bundles_post_ra>
